<compile_context>
chip_gen: v5e
topology: v5e:2x2
jax: 0.10.0
libtpu: 0.0.40
codegen_flags: <defaults>
</compile_context>

<pallas_src>
import math

import numpy as np
import jax
import jax.numpy as jnp
from jax.experimental import pallas as pl
from jax.experimental.pallas import tpu as pltpu

ALPHA = 0.5
BELTA = 0.5

LANES = 128            # lane width of a vreg
SUBLANES = 8           # f32 sublanes of a vreg
TILE_ROWS_TARGET = 1024            # rows per tile for large inputs
MAX_SINGLE_BLOCK_ROWS = 2048       # below this, use a single block (grid = 1)


def _round_up(x, m):
    return ((x + m - 1) // m) * m


def _make_kernel(use_scale):
    """Build the kernel body; `use_scale` is a static Python bool."""

    def body(preds_ref, labels_ref, mask_ref, inv_std_ref, acc_ref):
        @pl.when(pl.program_id(0) == 0)
        def _():
            acc_ref[...] = jnp.zeros_like(acc_ref)

        # Cast on load; all arithmetic in f32 (v5e has no bf16 VPU path).
        err = (preds_ref[...].astype(jnp.float32)
               - labels_ref[...].astype(jnp.float32))
        if use_scale:
            err = err * inv_std_ref[...]        # multiply by precomputed 1/std
        m = mask_ref[...].astype(jnp.float32)   # 0/1
        sq = err * err

        # Per-vreg accumulation: fold (TR, 128) -> (TR//8, 8, 128) and sum over
        # the leading axis (pure VPU adds, no XLU, no scalar RMW per step).
        tr = sq.shape[0]
        sq3 = sq.reshape(tr // SUBLANES, SUBLANES, LANES)
        msq3 = (sq * m).reshape(tr // SUBLANES, SUBLANES, LANES)
        m3 = m.reshape(tr // SUBLANES, SUBLANES, LANES)

        acc_ref[0, :, :] = acc_ref[0, :, :] + jnp.sum(sq3, axis=0)
        acc_ref[1, :, :] = acc_ref[1, :, :] + jnp.sum(msq3, axis=0)
        acc_ref[2, :, :] = acc_ref[2, :, :] + jnp.sum(m3, axis=0)

    if use_scale:
        def kernel(preds_ref, labels_ref, mask_ref, inv_std_ref, acc_ref):
            body(preds_ref, labels_ref, mask_ref, inv_std_ref, acc_ref)
    else:
        def kernel(preds_ref, labels_ref, mask_ref, acc_ref):
            body(preds_ref, labels_ref, mask_ref, None, acc_ref)
    return kernel


def _flatten_pad(x, padded_rows, dtype=None):
    flat = x.reshape(-1)
    if dtype is not None:
        flat = flat.astype(dtype)
    pad = padded_rows * LANES - flat.shape[0]
    if pad:
        flat = jnp.pad(flat, (0, pad))          # zero-pad: contributes 0 to sums
    return flat.reshape(padded_rows, LANES)


def _masked_sq_sums(preds_f, labels_f, mask_f, inv_std_tiled, tile_rows):
    """Returns (total_sq, ae_sq, ae_cnt) as a length-3 f32 vector."""
    rows = preds_f.shape[0]
    grid = (rows // tile_rows,)
    use_scale = inv_std_tiled is not None

    data_spec = pl.BlockSpec((tile_rows, LANES), lambda i: (i, 0))
    in_specs = [data_spec, data_spec, data_spec]
    args = [preds_f, labels_f, mask_f]
    if use_scale:
        # Constant block index: DMA'd once, not re-fetched per step.
        in_specs.append(pl.BlockSpec((tile_rows, LANES), lambda i: (0, 0)))
        args.append(inv_std_tiled)

    acc = pl.pallas_call(
        _make_kernel(use_scale),
        out_shape=jax.ShapeDtypeStruct((3, SUBLANES, LANES), jnp.float32),
        grid_spec=pltpu.PrefetchScalarGridSpec(
            num_scalar_prefetch=0,
            grid=grid,
            in_specs=in_specs,
            # Same block every step -> VMEM-resident accumulator (P3 pattern).
            out_specs=pl.BlockSpec((3, SUBLANES, LANES), lambda i: (0, 0, 0)),
        ),
        compiler_params=pltpu.CompilerParams(
            dimension_semantics=("arbitrary",)),
    )(*args)

    return jnp.sum(acc, axis=(1, 2))   # tiny final cross-lane reduce in JAX


class RecLossV2:
    """JAX/Pallas port of RecLoss_v2 (forward only)."""

    def __init__(self, df_std_values, h_dim, step, alpha, belta,
                 bernoulli=True):
        self.alpha = float(alpha)
        self.belta = float(belta)
        self.bernoulli = bernoulli
        self.h_dim = int(h_dim)
        std_1 = jnp.asarray(df_std_values, dtype=jnp.float32)
        self.std_1 = jnp.concatenate([std_1] * step)            # (step*feat,)
        self.std_2 = jnp.ones((h_dim,), dtype=jnp.float32)      # (h_dim,)
        # Exact reciprocal, computed once (hoists the divide out of the kernel).
        self.inv_std_1 = (1.0 / self.std_1).astype(jnp.float32)

    def _layout(self, total_elems):
        d = self.h_dim
        rows = -(-total_elems // LANES)
        # Row period of the std pattern in the lane-dense layout.
        p = d // math.gcd(d, LANES)
        row_align = (SUBLANES * p) // math.gcd(SUBLANES, p)     # lcm(8, P)
        if rows <= MAX_SINGLE_BLOCK_ROWS:
            tile_rows = _round_up(max(rows, 1), row_align)
            padded_rows = tile_rows                              # grid = 1
        else:
            tile_rows = _round_up(TILE_ROWS_TARGET, row_align)
            padded_rows = _round_up(rows, tile_rows)
        return tile_rows, padded_rows, p

    def _inv_std_tile(self, tile_rows, p):
        reps = (LANES * p) // self.h_dim                 # lcm(h_dim, 128)/h_dim
        pattern = jnp.tile(self.inv_std_1, reps).reshape(p, LANES)
        return jnp.tile(pattern, (tile_rows // p, 1))    # (tile_rows, 128)

    def __call__(self, flag, preds, labels, mask):
        # `flag` is a trace-time Python bool (matches the PyTorch ternary).
        flag = bool(flag)
        total_elems = int(np.prod(preds.shape))
        tile_rows, padded_rows, p = self._layout(total_elems)

        preds_f = _flatten_pad(preds, padded_rows)               # keep dtype
        labels_f = _flatten_pad(labels, padded_rows)
        mask_f = _flatten_pad(mask, padded_rows, dtype=jnp.bfloat16)

        inv_std_tiled = self._inv_std_tile(tile_rows, p) if flag else None
        # flag == False -> std_2 is all ones: skip the scaling multiply.

        total_sq, ae_sq, ae_cnt = _masked_sq_sums(
            preds_f, labels_f, mask_f, inv_std_tiled, tile_rows)

        mlm_sq = total_sq - ae_sq
        mlm_cnt = jnp.float32(total_elems) - ae_cnt
        mlm_loss = mlm_sq / mlm_cnt
        ae_loss = ae_sq / ae_cnt
        return self.alpha * mlm_loss + self.belta * ae_loss


def _reference(flag, preds, labels, mask, std_1, std_2, alpha, belta):
    nm = ~mask
    mlm_error = preds * nm - labels * nm
    ae_error = preds * mask - labels * mask
    std = std_1 if flag else std_2
    mlm_loss = jnp.sum((mlm_error / std) ** 2) / jnp.sum(nm)
    ae_loss = jnp.sum((ae_error / std) ** 2) / jnp.sum(mask)
    return alpha * mlm_loss + belta * ae_loss


if __name__ == "__main__":
    key = jax.random.PRNGKey(0)
    k_std, k_p, k_l, k_m = jax.random.split(key, 4)

    # Shapes consistent with the module: step=5 repeats of a per-feature std.
    STEP = 5
    FEAT = 8
    H_DIM = STEP * FEAT          # 40
    BATCH, SEQ = 2, 8            # 16 rows x 40 features

    df_std_values = jax.random.uniform(
        k_std, (FEAT,), dtype=jnp.float32, minval=0.5, maxval=1.5)

    preds = jax.random.normal(k_p, (BATCH, SEQ, H_DIM), dtype=jnp.float32)
    labels = jax.random.normal(k_l, (BATCH, SEQ, H_DIM), dtype=jnp.float32)
    mask = jax.random.bernoulli(k_m, p=0.3, shape=(BATCH, SEQ, H_DIM))

    loss_mod = RecLossV2(df_std_values, h_dim=H_DIM, step=STEP,
                         alpha=ALPHA, belta=BELTA)

    ok = True
    for flag in (True, False):
        out = jax.block_until_ready(loss_mod(flag, preds, labels, mask))
        ref = jax.block_until_ready(
            _reference(flag, preds, labels, mask,
                       loss_mod.std_1, loss_mod.std_2, ALPHA, BELTA))
        if not np.allclose(np.asarray(out), np.asarray(ref),
                           rtol=1e-5, atol=1e-5):
            ok = False

    if ok:
        print("KERNEL_OK")
</pallas_src>

<mosaic_0001>
module attributes {stable_mosaic.version = 11 : i64} {
  func.func @kernel(%arg0: i32, %arg1: memref<40x128xf32, #tpu.memory_space<vmem>>, %arg2: memref<40x128xf32, #tpu.memory_space<vmem>>, %arg3: memref<40x128xbf16, #tpu.memory_space<vmem>>, %arg4: memref<40x128xf32, #tpu.memory_space<vmem>>, %arg5: memref<3x8x128xf32, #tpu.memory_space<vmem>>) attributes {dimension_semantics = [#tpu.dimension_semantics<arbitrary>], iteration_bounds = array<i64: 1>, scalar_prefetch = 0 : i64, scratch_operands = 0 : i64, tpu.core_type = #tpu.core_type<tc>, window_params = [{transform_indices = @transform_0, window_bounds = array<i64: 40, 128>}, {transform_indices = @transform_1, window_bounds = array<i64: 40, 128>}, {transform_indices = @transform_2, window_bounds = array<i64: 40, 128>}, {pipeline_mode = #tpu.pipeline_mode<synchronous>, transform_indices = @transform_3, window_bounds = array<i64: 40, 128>}, {pipeline_mode = #tpu.pipeline_mode<synchronous>, transform_indices = @transform_4, window_bounds = array<i64: 3, 8, 128>}]} {
    %c0_i32 = arith.constant 0 : i32
    %0 = arith.cmpi eq, %arg0, %c0_i32 : i32
    %1 = arith.extui %0 : i1 to i32
    %c0_i32_0 = arith.constant 0 : i32
    %2 = arith.cmpi ne, %1, %c0_i32_0 : i32
    scf.if %2 {
      %cst_26 = arith.constant 0.000000e+00 : f32
      %36 = vector.broadcast %cst_26 : f32 to vector<3x8x128xf32>
      %c0_27 = arith.constant 0 : index
      %c0_28 = arith.constant 0 : index
      %c0_29 = arith.constant 0 : index
      %37 = vector.load %arg5[%c0_27, %c0_28, %c0_29] : memref<3x8x128xf32, #tpu.memory_space<vmem>>, vector<3x8x128xf32>
      tpu.vector_store %arg5[%c0_27, %c0_28, %c0_29], %36 {strides = array<i32>} : memref<3x8x128xf32, #tpu.memory_space<vmem>>, vector<3x8x128xf32>,
    } else {
    }
    %c0 = arith.constant 0 : index
    %c0_1 = arith.constant 0 : index
    %3 = vector.load %arg1[%c0, %c0_1] : memref<40x128xf32, #tpu.memory_space<vmem>>, vector<40x128xf32>
    %c0_2 = arith.constant 0 : index
    %c0_3 = arith.constant 0 : index
    %4 = vector.load %arg2[%c0_2, %c0_3] : memref<40x128xf32, #tpu.memory_space<vmem>>, vector<40x128xf32>
    %5 = arith.subf %3, %4 : vector<40x128xf32>
    %c0_4 = arith.constant 0 : index
    %c0_5 = arith.constant 0 : index
    %6 = vector.load %arg4[%c0_4, %c0_5] : memref<40x128xf32, #tpu.memory_space<vmem>>, vector<40x128xf32>
    %7 = arith.mulf %5, %6 : vector<40x128xf32>
    %c0_6 = arith.constant 0 : index
    %c0_7 = arith.constant 0 : index
    %8 = vector.load %arg3[%c0_6, %c0_7] : memref<40x128xbf16, #tpu.memory_space<vmem>>, vector<40x128xbf16>
    %9 = arith.extf %8 : vector<40x128xbf16> to vector<40x128xf32>
    %10 = arith.mulf %7, %7 : vector<40x128xf32>
    %11 = vector.shape_cast %10 : vector<40x128xf32> to vector<5x8x128xf32>
    %12 = arith.mulf %10, %9 : vector<40x128xf32>
    %13 = vector.shape_cast %12 : vector<40x128xf32> to vector<5x8x128xf32>
    %14 = vector.shape_cast %9 : vector<40x128xf32> to vector<5x8x128xf32>
    %c0_8 = arith.constant 0 : index
    %c0_9 = arith.constant 0 : index
    %c0_10 = arith.constant 0 : index
    %15 = vector.load %arg5[%c0_8, %c0_9, %c0_10] : memref<3x8x128xf32, #tpu.memory_space<vmem>>, vector<1x8x128xf32>
    %16 = vector.shape_cast %15 : vector<1x8x128xf32> to vector<8x128xf32>
    %cst = arith.constant dense<0.000000e+00> : vector<8x128xf32>
    %17 = vector.multi_reduction <add>, %11, %cst [0] : vector<5x8x128xf32> to vector<8x128xf32>
    %18 = arith.addf %16, %17 : vector<8x128xf32>
    %c0_11 = arith.constant 0 : index
    %c0_12 = arith.constant 0 : index
    %c0_13 = arith.constant 0 : index
    %19 = vector.load %arg5[%c0_11, %c0_12, %c0_13] : memref<3x8x128xf32, #tpu.memory_space<vmem>>, vector<1x8x128xf32>
    %20 = vector.shape_cast %19 : vector<1x8x128xf32> to vector<8x128xf32>
    %21 = vector.shape_cast %18 : vector<8x128xf32> to vector<1x8x128xf32>
    tpu.vector_store %arg5[%c0_11, %c0_12, %c0_13], %21 {strides = array<i32>} : memref<3x8x128xf32, #tpu.memory_space<vmem>>, vector<1x8x128xf32>,
    %c1 = arith.constant 1 : index
    %c0_14 = arith.constant 0 : index
    %c0_15 = arith.constant 0 : index
    %22 = vector.load %arg5[%c1, %c0_14, %c0_15] : memref<3x8x128xf32, #tpu.memory_space<vmem>>, vector<1x8x128xf32>
    %23 = vector.shape_cast %22 : vector<1x8x128xf32> to vector<8x128xf32>
    %cst_16 = arith.constant dense<0.000000e+00> : vector<8x128xf32>
    %24 = vector.multi_reduction <add>, %13, %cst_16 [0] : vector<5x8x128xf32> to vector<8x128xf32>
    %25 = arith.addf %23, %24 : vector<8x128xf32>
    %c1_17 = arith.constant 1 : index
    %c0_18 = arith.constant 0 : index
    %c0_19 = arith.constant 0 : index
    %26 = vector.load %arg5[%c1_17, %c0_18, %c0_19] : memref<3x8x128xf32, #tpu.memory_space<vmem>>, vector<1x8x128xf32>
    %27 = vector.shape_cast %26 : vector<1x8x128xf32> to vector<8x128xf32>
    %28 = vector.shape_cast %25 : vector<8x128xf32> to vector<1x8x128xf32>
    tpu.vector_store %arg5[%c1_17, %c0_18, %c0_19], %28 {strides = array<i32>} : memref<3x8x128xf32, #tpu.memory_space<vmem>>, vector<1x8x128xf32>,
    %c2 = arith.constant 2 : index
    %c0_20 = arith.constant 0 : index
    %c0_21 = arith.constant 0 : index
    %29 = vector.load %arg5[%c2, %c0_20, %c0_21] : memref<3x8x128xf32, #tpu.memory_space<vmem>>, vector<1x8x128xf32>
    %30 = vector.shape_cast %29 : vector<1x8x128xf32> to vector<8x128xf32>
    %cst_22 = arith.constant dense<0.000000e+00> : vector<8x128xf32>
    %31 = vector.multi_reduction <add>, %14, %cst_22 [0] : vector<5x8x128xf32> to vector<8x128xf32>
    %32 = arith.addf %30, %31 : vector<8x128xf32>
    %c2_23 = arith.constant 2 : index
    %c0_24 = arith.constant 0 : index
    %c0_25 = arith.constant 0 : index
    %33 = vector.load %arg5[%c2_23, %c0_24, %c0_25] : memref<3x8x128xf32, #tpu.memory_space<vmem>>, vector<1x8x128xf32>
    %34 = vector.shape_cast %33 : vector<1x8x128xf32> to vector<8x128xf32>
    %35 = vector.shape_cast %32 : vector<8x128xf32> to vector<1x8x128xf32>
    tpu.vector_store %arg5[%c2_23, %c0_24, %c0_25], %35 {strides = array<i32>} : memref<3x8x128xf32, #tpu.memory_space<vmem>>, vector<1x8x128xf32>,
    return
  }
  func.func @transform_0(%arg0: i32) -> (i32, i32) {
    %c0_i32 = arith.constant 0 : i32
    %c0_i32_0 = arith.constant 0 : i32
    return %arg0, %c0_i32 : i32, i32
  }
  func.func @transform_1(%arg0: i32) -> (i32, i32) {
    %c0_i32 = arith.constant 0 : i32
    %c0_i32_0 = arith.constant 0 : i32
    return %arg0, %c0_i32 : i32, i32
  }
  func.func @transform_2(%arg0: i32) -> (i32, i32) {
    %c0_i32 = arith.constant 0 : i32
    %c0_i32_0 = arith.constant 0 : i32
    return %arg0, %c0_i32 : i32, i32
  }
  func.func @transform_3(%arg0: i32) -> (i32, i32) {
    %c0_i32 = arith.constant 0 : i32
    %c0_i32_0 = arith.constant 0 : i32
    %c0_i32_1 = arith.constant 0 : i32
    return %c0_i32, %c0_i32_0 : i32, i32
  }
  func.func @transform_4(%arg0: i32) -> (i32, i32, i32) {
    %c0_i32 = arith.constant 0 : i32
    %c0_i32_0 = arith.constant 0 : i32
    %c0_i32_1 = arith.constant 0 : i32
    %c0_i32_2 = arith.constant 0 : i32
    return %c0_i32, %c0_i32_0, %c0_i32_1 : i32, i32, i32
  }
}

</mosaic_0001>

<bundles_post_ra>
// kernel: tpu_custom_call.1
= control target key start
LH: loop header
LB: loop body
LE: loop exit
PB: predicated region body
PF: predicated region fallthrough
CT: control target
= control target key end

     0   :  { %9 = vsyncpa [#allocation3], 0  ;;  %s385_s0 = inlined_call_operand.hbm [shape: f32[40,128], index: 0, kind: input, shape index: {}]   ;;  %s386_s1 = inlined_call_operand.hbm [shape: f32[40,128], index: 1, kind: input, shape index: {}]   ;;  %s387_s2 = inlined_call_operand.hbm [shape: bf16[40,128], index: 2, kind: input, shape index: {}]   ;;  %s388_s3 = inlined_call_operand.hbm [shape: f32[40,128], index: 3, kind: input, shape index: {}]   ;;  %s389_s4 = inlined_call_operand.hbm [shape: f32[3,8,128], index: 4, kind: output, shape index: {}]  }
   0x1   :  { %10 = vsyncpa [#allocation6], 0 }
   0x2   :  { %11 = vsyncpa [#allocation9], 0 }
   0x3   :  { %12 = vsyncpa [#allocation4], 0  ;;  %s30_s17 = sshll.u32 %s386_s1, 4  ;;  %s324_s18 = smov [#allocation5]   ;;  %s31_s17 = int_to_ptr.hbm [resolvable:$true] %s30_s17 }
   0x4   :  { %s32_s19 = sshll.u32 %s324_s18, 4  ;;  %s17_s22 = sshll.u32 %s385_s0, 4  ;;  %s33_s19 = int_to_ptr.vmem [resolvable:$true] %s32_s19  ;;  %s18_s22 = int_to_ptr.hbm [resolvable:$true] %s17_s22 }
   0x5   :  { %s325_s23 = smov 128   ;;  %s326_s24 = smov 8  }
   0x6   :  { %38 = dma.hbm_to_vmem [thread:$0]  %s31_s17, 640, %s33_s19, [#allocation6], %s325_s23, %s325_s23, %s326_s24  }
   0x7   :  { %s327_s25 = smov [#allocation2]   ;;  %s43_s1 = sshll.u32 %s387_s2, 4  ;;  %s44_s1 = int_to_ptr.hbm [resolvable:$true] %s43_s1 }
   0x8   :  { %s19_s26 = sshll.u32 %s327_s25, 4  ;;  %s328_s0 = smov [#allocation7]   ;;  %s20_s26 = int_to_ptr.vmem [resolvable:$true] %s19_s26 }
   0x9   :  { %25 = dma.hbm_to_vmem [thread:$0]  %s18_s22, 640, %s20_s26, [#allocation3], %s325_s23, %s325_s23, %s326_s24  }
   0xa   :  { %s45_s29 = sshll.u32 %s328_s0, 4  ;;  %s56_s6 = sshll.u32 %s388_s3, 4  ;;  %s46_s29 = int_to_ptr.vmem [resolvable:$true] %s45_s29  ;;  %s57_s6 = int_to_ptr.hbm [resolvable:$true] %s56_s6 }
   0xb   :  { %s329_s7 = smov 64   ;;  %s330_s8 = smov 4  }
   0xc   :  { %51 = dma.hbm_to_vmem [thread:$0]  %s44_s1, 320, %s46_s29, [#allocation6], %s329_s7, %s329_s7, %s330_s8  }
   0xd   :  { %s331_s9 = smov [#allocation8]  }
   0xe   :  { %s58_s10 = sshll.u32 %s331_s9, 4  ;;  %s59_s10 = int_to_ptr.vmem [resolvable:$true] %s58_s10 }
   0xf   :  { %64 = dma.hbm_to_vmem [thread:$0]  %s57_s6, 640, %s59_s10, [#allocation9], %s325_s23, %s325_s23, %s326_s24  }
  0x10   :  { %316 = dma.done.wait [#allocation3], 640  }
  0x11   :  { %317 = vsyncadd [#allocation3], 4294966656 }
  0x12   :  { %318 = dma.done.wait [#allocation6], 960  }
  0x13   :  { %319 = vsyncadd [#allocation6], 4294966336 }
  0x14   :  { %320 = dma.done.wait [#allocation9], 640  }
  0x15   :  { %321 = vsyncadd [#allocation9], 4294966656  ;;  %v88_v0 = vld [vmem:[#allocation2] sm:$0xff]  ;;  %v89_v1 = vld [vmem:[#allocation2 + $0x8] sm:$0xff]  ;;  %s332_s2 = smov [#allocation10]   ;;  %s162_s13 = sshll.u32 %s389_s4, 4  ;;  %s163_s13 = int_to_ptr.hbm [resolvable:$true] %s162_s13 }
  0x16   :  { %v90_v2 = vld [vmem:[#allocation2 + $0x10] sm:$0xff]  ;;  %v91_v3 = vld [vmem:[#allocation2 + $0x18] sm:$0xff]  ;;  %v92_v4 = vld [vmem:[#allocation2 + $0x20] sm:$0xff]  ;;  %s160_s3 = sshll.u32 %s332_s2, 4  ;;  %s161_s3 = int_to_ptr.vmem [resolvable:$true] %s160_s3 }
  0x17   :  { %v93_v5 = vld [vmem:[#allocation5] sm:$0xff]  ;;  %v94_v6 = vld [vmem:[#allocation5 + $0x8] sm:$0xff]  ;;  %v95_v7 = vld [vmem:[#allocation5 + $0x10] sm:$0xff] }
  0x18   :  { %v96_v8 = vld [vmem:[#allocation5 + $0x18] sm:$0xff]  ;;  %v98_v9 = vsub.f32 %v88_v0, %v93_v5  ;;  %v97_v10 = vld [vmem:[#allocation5 + $0x20] sm:$0xff]  ;;  %v99_v11 = vsub.f32 %v89_v1, %v94_v6  ;;  %v100_v12 = vsub.f32 %v90_v2, %v95_v7  ;;  %v105_v17 = vld [vmem:[#allocation8 + $0x10] sm:$0xff] }
  0x19   :  { %v101_v13 = vsub.f32 %v91_v3, %v96_v8  ;;  %v103_v14 = vld [vmem:[#allocation8] sm:$0xff]  ;;  %v104_v15 = vld [vmem:[#allocation8 + $0x8] sm:$0xff]  ;;  %v102_v16 = vsub.f32 %v92_v4, %v97_v10  ;;  %v106_v18 = vld [vmem:[#allocation8 + $0x18] sm:$0xff] }
  0x1a   :  { %v107_v19 = vld [vmem:[#allocation8 + $0x20] sm:$0xff]  ;;  %v108_v20 = vmul.f32 %v103_v14, %v98_v9  ;;  %v109_v21 = vmul.f32 %v104_v15, %v99_v11  ;;  %v110_v22 = vmul.f32 %v105_v17, %v100_v12  ;;  %v178_v24 = vld [vmem:[#allocation7] sm:$0xff]   ;;  %v185_v25 = vld [vmem:[#allocation7 + $0x8] sm:$0xff]  }
  0x1b   :  { %v111_v23 = vmul.f32 %v106_v18, %v101_v13  ;;  %v117_v26 = vld [vmem:[#allocation7 + $0x10] sm:$0xf]  ;;  %v112_v27 = vmul.f32 %v107_v19, %v102_v16  ;;  %v179_v29 = vunpack.c.l.bf16 %v178_v24  ;;  %v180_v30 = vunpack.c.h.bf16 %v178_v24 }
  0x1c   :  { %v123_v28 = vmul.f32 %v108_v20, %v108_v20  ;;  %v124_v31 = vmul.f32 %v109_v21, %v109_v21  ;;  %v125_v32 = vmul.f32 %v110_v22, %v110_v22  ;;  %v183_v34 = vunpack.c.l.bf16 %v185_v25 }
  0x1d   :  { %v126_v33 = vmul.f32 %v111_v23, %v111_v23  ;;  %v127_v35 = vmul.f32 %v112_v27, %v112_v27  ;;  %v184_v36 = vunpack.c.h.bf16 %v185_v25  ;;  %v122_v37 = vunpack.c.l.bf16 %v117_v26 }
  0x1e   :  { %v128_v38 = vmul.f32 %v179_v29, %v123_v28  ;;  %v134_v39 = vadd.f32 %v124_v31, %v123_v28  ;;  %v129_v40 = vmul.f32 %v180_v30, %v124_v31  ;;  %v130_v41 = vmul.f32 %v183_v34, %v125_v32 }
  0x1f   :  { %v150_v42 = vadd.f32 %v180_v30, %v179_v29  ;;  %v131_v44 = vmul.f32 %v184_v36, %v126_v33  ;;  %v132_v48 = vmul.f32 %v127_v35, %v122_v37 }
  0x20   :  { %v135_v43 = vadd.f32 %v134_v39, %v125_v32  ;;  %v142_v45 = vadd.f32 %v129_v40, %v128_v38 }
  0x21   :  { %v151_v46 = vadd.f32 %v183_v34, %v150_v42 }
  0x22   :  { %v136_v47 = vadd.f32 %v135_v43, %v126_v33  ;;  %v143_v49 = vadd.f32 %v142_v45, %v130_v41 }
  0x23   :  { %v152_v50 = vadd.f32 %v184_v36, %v151_v46 }
  0x24   :  { %v137_v51 = vadd.f32 %v136_v47, %v127_v35  ;;  %v144_v52 = vadd.f32 %v143_v49, %v131_v44 }
  0x25   :  { %v153_v53 = vadd.f32 %v152_v50, %v122_v37 }
  0x26   :  { %v145_v54 = vadd.f32 %v144_v52, %v132_v48  ;;  %139 = vst [vmem:[#allocation10] sm:$0xff] %v137_v51 }
  0x27   :  { %155 = vst [vmem:[#allocation10 + $0x10] sm:$0xff] %v153_v53 }
  0x28   :  { %147 = vst [vmem:[#allocation10 + $0x8] sm:$0xff] %v145_v54 }
  0x29   :  { %168 = dma.vmem_to_hbm [thread:$0]  %s161_s3, 384, %s163_s13, [#allocation4], %s325_s23, %s325_s23, %s326_s24  }
  0x2a   :  { %322 = dma.done.wait [#allocation4], 384  }
  0x2b   :  { %323 = vsyncadd [#allocation4], 4294966912 }
  0x2c   :  { %173 = vsyncpa [#allocation3], 1 }
  0x2d   :  { %174 = vsyncpa [#allocation6], 1 }
  0x2e   :  { %175 = vsyncpa [#allocation9], 1 }
  0x2f   :  { %176 = vsyncpa [#allocation4], 1 }

</bundles_post_ra>
